<compile_context>
chip_gen: v7x
topology: tpu7x:2x2x1
jax: 0.10.0
libtpu: 0.0.40
codegen_flags: <defaults>
</compile_context>

<pallas_src>
import jax
import jax.numpy as jnp
from jax.experimental import pallas as pl
from jax.experimental.pallas import tpu as pltpu

LANE = 128                      # TPU vreg lane width
COMPUTE_DTYPE = jnp.bfloat16    # used for x / W1 (input layer) only


def goodness_kernel(x_ref, w1_ref, b1_ref, w2_ref, b2_ref, w3_ref, b3_ref, o_ref):
    # x_ref: (IN, TB) bf16, batch on lanes.  Weights (out, in); biases (out, 1).
    # Layer 1: bf16 x / bf16 W1 on the MXU with f32 accumulation.
    h1 = jnp.dot(w1_ref[...], x_ref[...], preferred_element_type=jnp.float32)
    h1 = jnp.maximum(h1 + b1_ref[...], 0.0)                      # (H1, TB) f32
    # Layers 2/3: f32 weights x f32 activations (no bf16 round-trips).
    h2 = jnp.dot(w2_ref[...], h1, preferred_element_type=jnp.float32)
    h2 = jnp.maximum(h2 + b2_ref[...], 0.0)                      # (H2, TB) f32
    o_ref[...] = (jnp.dot(w3_ref[...], h2, preferred_element_type=jnp.float32)
                  + b3_ref[...])                                 # (1, TB) f32
    # TODO(synk): for tiny grids the M=1,K=32 final dot could be folded into a
    # VPU multiply + sublane reduce to avoid an MXU fill/drain (latency only).


def _round_up(x, m):
    return ((x + m - 1) // m) * m


def _pick_batch_tile(batch, tb_max):
    """Batch tile = lane width of every block inside the kernel."""
    tb_max = max(256, (int(tb_max) // 256) * 256)
    tb_cover = _round_up(max(batch, 1), LANE)
    if tb_cover <= 256:
        return tb_cover                      # tiny batch: one small block
    # Large batch: big tiles amortise the ~0.35 us per-grid-step overhead, but
    # keep at least 2 grid steps so both v7x TensorCores get work on the
    # "parallel" axis.  TB is a multiple of 256.
    tb = min(tb_max, _round_up((batch + 1) // 2, 256))
    return max(256, tb)


def goodness_net(x, params, *, tb_max=16 * 1024):
    """x: (B, input_size) -> (B, output_size), matching GoodnessNet.forward."""
    w1, b1, w2, b2, w3, b3 = params
    B, in_size = x.shape
    h1_size, h2_size, out_size = w1.shape[0], w2.shape[0], w3.shape[0]

    TB = int(_pick_batch_tile(B, tb_max))
    B_pad = int(_round_up(B, TB))
    grid = (B_pad // TB,)

    # Single fused cast(+pad)+transpose pass producing x in (features, batch)
    # layout with batch on the lane axis (layout plumbing, one HBM pass).
    xc = x.astype(COMPUTE_DTYPE)
    if B_pad != B:
        xc = jnp.pad(xc, ((0, B_pad - B), (0, 0)))
    x_t = xc.T                                                   # (in_size, B_pad)

    def batch_block(i):
        return (0, i)

    def resident(i):            # constant index_map: weights/biases stay in
        return (0, 0)           # VMEM and are never re-DMA'd across the grid

    w_bytes = (w1.size * jnp.dtype(w1.dtype).itemsize
               + (w2.size + w3.size + h1_size + h2_size + out_size) * 4)
    flops = 2 * B_pad * (in_size * h1_size + h1_size * h2_size
                         + h2_size * out_size)
    bytes_accessed = (B_pad * in_size * 2        # x (bf16) read
                      + w_bytes                  # resident weights/biases
                      + B_pad * out_size * 4)    # output write

    out = pl.pallas_call(
        goodness_kernel,
        out_shape=jax.ShapeDtypeStruct((out_size, B_pad), jnp.float32),
        grid=grid,
        in_specs=[
            pl.BlockSpec((in_size, TB), batch_block),      # x tile, pipelined
            pl.BlockSpec((h1_size, in_size), resident),    # W1 (bf16)
            pl.BlockSpec((h1_size, 1), resident),          # b1 (f32)
            pl.BlockSpec((h2_size, h1_size), resident),    # W2 (f32)
            pl.BlockSpec((h2_size, 1), resident),          # b2 (f32)
            pl.BlockSpec((out_size, h2_size), resident),   # W3 (f32)
            pl.BlockSpec((out_size, 1), resident),         # b3 (f32)
        ],
        out_specs=pl.BlockSpec((out_size, TB), batch_block),   # lane-dense
        compiler_params=pltpu.CompilerParams(
            dimension_semantics=("parallel",),
            # > v5e's 16 MiB default scoped VMEM (big tiles need ~10-15 MiB
            # with double-buffering), safely < v7x's 64 MiB physical VMEM.
            vmem_limit_bytes=40 * 1024 * 1024),
        cost_estimate=pl.CostEstimate(
            flops=int(flops), transcendentals=0,
            bytes_accessed=int(bytes_accessed)),
    )(x_t, w1, b1, w2, b2, w3, b3)

    return out[:, :B].T                                         # (B, out_size)


def init_params(key, input_size=10, hidden1=64, hidden2=32, output_size=1):
    """nn.Linear-style init: U(-1/sqrt(fan_in), 1/sqrt(fan_in)).

    Weights kept in PyTorch's (out, in) layout, biases as (out, 1) columns.
    W1 is bf16 (feeds the bf16 input matmul); W2/W3 and all biases stay f32.
    """
    ks = jax.random.split(key, 6)

    def linear(kw, kb, fan_in, fan_out, w_dtype):
        bound = 1.0 / jnp.sqrt(jnp.float32(fan_in))
        w = jax.random.uniform(kw, (fan_out, fan_in), jnp.float32, -bound, bound)
        b = jax.random.uniform(kb, (fan_out, 1), jnp.float32, -bound, bound)
        return w.astype(w_dtype), b

    w1, b1 = linear(ks[0], ks[1], input_size, hidden1, COMPUTE_DTYPE)
    w2, b2 = linear(ks[2], ks[3], hidden1, hidden2, jnp.float32)
    w3, b3 = linear(ks[4], ks[5], hidden2, output_size, jnp.float32)
    return (w1, b1, w2, b2, w3, b3)


def reference(x, params):
    """Pure-jnp reference mirroring the kernel's dtype path."""
    w1, b1, w2, b2, w3, b3 = params
    xt = x.astype(w1.dtype).T
    h1 = jnp.maximum(
        jnp.dot(w1, xt, preferred_element_type=jnp.float32) + b1, 0.0)
    h2 = jnp.maximum(
        jnp.dot(w2, h1, preferred_element_type=jnp.float32,
                precision=jax.lax.Precision.HIGHEST) + b2, 0.0)
    out = jnp.dot(w3, h2, preferred_element_type=jnp.float32,
                  precision=jax.lax.Precision.HIGHEST) + b3
    return out.T


if __name__ == "__main__":
    key = jax.random.PRNGKey(0)
    k_x, k_x2, k_p = jax.random.split(key, 3)

    input_size, hidden1, hidden2, output_size = 10, 64, 32, 1
    params = init_params(k_p, input_size, hidden1, hidden2, output_size)

    # Small batch (single grid step), matching the torch module's usage.
    batch = 8
    x = jax.random.normal(k_x, (batch, input_size), jnp.float32)
    out = jax.block_until_ready(goodness_net(x, params))
    ref = reference(x, params)
    assert out.shape == (batch, output_size), out.shape
    assert jnp.allclose(out, ref, atol=2e-3, rtol=2e-3), "small-batch mismatch"

    # Ragged larger batch: exercises multi-step grid, padding tail, and the
    # "parallel" batch axis (grid >= 2).
    batch2 = 600
    x2 = jax.random.normal(k_x2, (batch2, input_size), jnp.float32)
    out2 = jax.block_until_ready(goodness_net(x2, params))
    ref2 = reference(x2, params)
    assert out2.shape == (batch2, output_size), out2.shape
    assert jnp.allclose(out2, ref2, atol=2e-3, rtol=2e-3), "multi-block mismatch"

    print("KERNEL_OK")
</pallas_src>

<mosaic_0001>
module attributes {stable_mosaic.version = 11 : i64} {
  func.func @goodness_kernel(%arg0: i32, %arg1: memref<10x128xbf16, #tpu.memory_space<vmem>>, %arg2: memref<64x10xbf16, #tpu.memory_space<vmem>>, %arg3: memref<64x1xf32, #tpu.memory_space<vmem>>, %arg4: memref<32x64xf32, #tpu.memory_space<vmem>>, %arg5: memref<32x1xf32, #tpu.memory_space<vmem>>, %arg6: memref<1x32xf32, #tpu.memory_space<vmem>>, %arg7: memref<1x1xf32, #tpu.memory_space<vmem>>, %arg8: memref<1x128xf32, #tpu.memory_space<vmem>>) attributes {dimension_semantics = [#tpu.dimension_semantics<parallel>], iteration_bounds = array<i64: 1>, scalar_prefetch = 0 : i64, scratch_operands = 0 : i64, tpu.core_type = #tpu.core_type<tc>, window_params = [{transform_indices = @transform_0, window_bounds = array<i64: 10, 128>}, {pipeline_mode = #tpu.pipeline_mode<synchronous>, transform_indices = @transform_1, window_bounds = array<i64: 64, 10>}, {pipeline_mode = #tpu.pipeline_mode<synchronous>, transform_indices = @transform_2, window_bounds = array<i64: 64, 1>}, {pipeline_mode = #tpu.pipeline_mode<synchronous>, transform_indices = @transform_3, window_bounds = array<i64: 32, 64>}, {pipeline_mode = #tpu.pipeline_mode<synchronous>, transform_indices = @transform_4, window_bounds = array<i64: 32, 1>}, {pipeline_mode = #tpu.pipeline_mode<synchronous>, transform_indices = @transform_5, window_bounds = array<i64: 1, 32>}, {pipeline_mode = #tpu.pipeline_mode<synchronous>, transform_indices = @transform_6, window_bounds = array<i64: 1, 1>}, {transform_indices = @transform_7, window_bounds = array<i64: 1, 128>}]} {
    %c0 = arith.constant 0 : index
    %c0_0 = arith.constant 0 : index
    %0 = vector.load %arg2[%c0, %c0_0] : memref<64x10xbf16, #tpu.memory_space<vmem>>, vector<64x10xbf16>
    %c0_1 = arith.constant 0 : index
    %c0_2 = arith.constant 0 : index
    %1 = vector.load %arg1[%c0_1, %c0_2] : memref<10x128xbf16, #tpu.memory_space<vmem>>, vector<10x128xbf16>
    %cst = arith.constant dense<0.000000e+00> : vector<64x128xf32>
    %2 = tpu.matmul %0, %1, %cst {dimension_numbers = #tpu.dot_dimension_numbers<[1], [0], [0], [1], [0, 0, 1, 1], [], []>} : vector<64x10xbf16>, vector<10x128xbf16>, vector<64x128xf32> -> vector<64x128xf32>
    %c0_3 = arith.constant 0 : index
    %c0_4 = arith.constant 0 : index
    %3 = vector.load %arg3[%c0_3, %c0_4] : memref<64x1xf32, #tpu.memory_space<vmem>>, vector<64x1xf32>
    %4 = vector.broadcast %3 : vector<64x1xf32> to vector<64x128xf32>
    %5 = arith.addf %2, %4 : vector<64x128xf32>
    %cst_5 = arith.constant 0.000000e+00 : f32
    %6 = vector.broadcast %cst_5 : f32 to vector<64x128xf32>
    %7 = arith.maximumf %5, %6 : vector<64x128xf32>
    %c0_6 = arith.constant 0 : index
    %c0_7 = arith.constant 0 : index
    %8 = vector.load %arg4[%c0_6, %c0_7] : memref<32x64xf32, #tpu.memory_space<vmem>>, vector<32x64xf32>
    %cst_8 = arith.constant dense<0.000000e+00> : vector<32x128xf32>
    %9 = tpu.matmul %8, %7, %cst_8 {dimension_numbers = #tpu.dot_dimension_numbers<[1], [0], [0], [1], [0, 0, 1, 1], [], []>} : vector<32x64xf32>, vector<64x128xf32>, vector<32x128xf32> -> vector<32x128xf32>
    %c0_9 = arith.constant 0 : index
    %c0_10 = arith.constant 0 : index
    %10 = vector.load %arg5[%c0_9, %c0_10] : memref<32x1xf32, #tpu.memory_space<vmem>>, vector<32x1xf32>
    %11 = vector.broadcast %10 : vector<32x1xf32> to vector<32x128xf32>
    %12 = arith.addf %9, %11 : vector<32x128xf32>
    %cst_11 = arith.constant 0.000000e+00 : f32
    %13 = vector.broadcast %cst_11 : f32 to vector<32x128xf32>
    %14 = arith.maximumf %12, %13 : vector<32x128xf32>
    %c0_12 = arith.constant 0 : index
    %c0_13 = arith.constant 0 : index
    %15 = vector.load %arg6[%c0_12, %c0_13] : memref<1x32xf32, #tpu.memory_space<vmem>>, vector<1x32xf32>
    %cst_14 = arith.constant dense<0.000000e+00> : vector<1x128xf32>
    %16 = tpu.matmul %15, %14, %cst_14 {dimension_numbers = #tpu.dot_dimension_numbers<[1], [0], [0], [1], [0, 0, 1, 1], [], []>} : vector<1x32xf32>, vector<32x128xf32>, vector<1x128xf32> -> vector<1x128xf32>
    %c0_15 = arith.constant 0 : index
    %c0_16 = arith.constant 0 : index
    %17 = vector.load %arg7[%c0_15, %c0_16] : memref<1x1xf32, #tpu.memory_space<vmem>>, vector<1x1xf32>
    %18 = vector.broadcast %17 : vector<1x1xf32> to vector<1x128xf32>
    %19 = arith.addf %16, %18 : vector<1x128xf32>
    %c0_17 = arith.constant 0 : index
    %c0_18 = arith.constant 0 : index
    %20 = vector.load %arg8[%c0_17, %c0_18] : memref<1x128xf32, #tpu.memory_space<vmem>>, vector<1x128xf32>
    tpu.vector_store %arg8[%c0_17, %c0_18], %19 {strides = array<i32>} : memref<1x128xf32, #tpu.memory_space<vmem>>, vector<1x128xf32>,
    return
  }
  func.func @transform_0(%arg0: i32) -> (i32, i32) {
    %c0_i32 = arith.constant 0 : i32
    %c0_i32_0 = arith.constant 0 : i32
    return %c0_i32, %arg0 : i32, i32
  }
  func.func @transform_1(%arg0: i32) -> (i32, i32) {
    %c0_i32 = arith.constant 0 : i32
    %c0_i32_0 = arith.constant 0 : i32
    %c0_i32_1 = arith.constant 0 : i32
    return %c0_i32, %c0_i32_0 : i32, i32
  }
  func.func @transform_2(%arg0: i32) -> (i32, i32) {
    %c0_i32 = arith.constant 0 : i32
    %c0_i32_0 = arith.constant 0 : i32
    %c0_i32_1 = arith.constant 0 : i32
    return %c0_i32, %c0_i32_0 : i32, i32
  }
  func.func @transform_3(%arg0: i32) -> (i32, i32) {
    %c0_i32 = arith.constant 0 : i32
    %c0_i32_0 = arith.constant 0 : i32
    %c0_i32_1 = arith.constant 0 : i32
    return %c0_i32, %c0_i32_0 : i32, i32
  }
  func.func @transform_4(%arg0: i32) -> (i32, i32) {
    %c0_i32 = arith.constant 0 : i32
    %c0_i32_0 = arith.constant 0 : i32
    %c0_i32_1 = arith.constant 0 : i32
    return %c0_i32, %c0_i32_0 : i32, i32
  }
  func.func @transform_5(%arg0: i32) -> (i32, i32) {
    %c0_i32 = arith.constant 0 : i32
    %c0_i32_0 = arith.constant 0 : i32
    %c0_i32_1 = arith.constant 0 : i32
    return %c0_i32, %c0_i32_0 : i32, i32
  }
  func.func @transform_6(%arg0: i32) -> (i32, i32) {
    %c0_i32 = arith.constant 0 : i32
    %c0_i32_0 = arith.constant 0 : i32
    %c0_i32_1 = arith.constant 0 : i32
    return %c0_i32, %c0_i32_0 : i32, i32
  }
  func.func @transform_7(%arg0: i32) -> (i32, i32) {
    %c0_i32 = arith.constant 0 : i32
    %c0_i32_0 = arith.constant 0 : i32
    return %c0_i32, %arg0 : i32, i32
  }
}

</mosaic_0001>

<bundles_post_ra>
// kernel: tpu_custom_call.1
= control target key start
LH: loop header
LB: loop body
LE: loop exit
PB: predicated region body
PF: predicated region fallthrough
CT: control target
= control target key end

     0   :  { %s705_s0 = inlined_call_operand.vmem [shape: bf16[10,128], index: 0, kind: input, shape index: {}]   ;;  %s706_s1 = inlined_call_operand.vmem [shape: bf16[64,10], index: 1, kind: input, shape index: {}]   ;;  %s707_s2 = inlined_call_operand.vmem [shape: f32[64,1], index: 2, kind: input, shape index: {}]   ;;  %s708_s3 = inlined_call_operand.vmem [shape: f32[32,64], index: 3, kind: input, shape index: {}]   ;;  %s709_s4 = inlined_call_operand.vmem [shape: f32[32,1], index: 4, kind: input, shape index: {}]   ;;  %s710_s5 = inlined_call_operand.vmem [shape: f32[1,32], index: 5, kind: input, shape index: {}]   ;;  %s711_s6 = inlined_call_operand.<no memory space> [shape: f32[1,1], index: 6, kind: input, shape index: {}]   ;;  %s712_s7 = inlined_call_operand.hbm [shape: f32[1,128], index: 7, kind: output, shape index: {}]  }
   0x1   :  { %v12_v0 = vstv %s711_s6 }
   0x2   :  { %13 = vst [vmem:[#allocation2] sm:$0x1] %v12_v0 }
   0x3   :  { %v542_v1 = vld [vmem:[%s705_s0] sm:$0x1f]   ;;  %vm126_vm0 = vcmask 1044480   ;;  %vm113_vm1 = vcmask 80896   ;;  %v544_v4 = vld [vmem:[%s706_s1 + $0x8] sm:$0xff]   ;;  %v545_v5 = vld [vmem:[%s706_s1 + $0x10] sm:$0xff]  }
   0x4   :  { %v543_v2 = vld [vmem:[%s706_s1] sm:$0xff]   ;;  %534 = vmatprep.subr.msk.bf16.mxu0 %vm126_vm0, %v542_v1  ;;  %v128_v3 = vsel %vm126_vm0, %v542_v1, 0  ;;  %v571_v6 = vmov 0   ;;  %v42_v8 = vld [vmem:[%s707_s2 + $0x10] sm:$0xff]  ;;  %v41_v9 = vld [vmem:[%s707_s2 + $0x8] sm:$0xff] }
   0x5   :  { %470 = vmatpush3.bf16.msra.mxu0 %v128_v3  ;;  %471 = vmatprep.mubr.msk.bf16.mxu0 %vm113_vm1, %v543_v2  ;;  %v40_v7 = vld [vmem:[%s707_s2] sm:$0xff]  ;;  %v43_v10 = vld [vmem:[%s707_s2 + $0x18] sm:$0xff] }
   0x6   :  { %540 = vset.pattern.permute.xlu0 %v571_v6  ;;  %541 = vset.pattern.permute.xlu1 %v571_v6 }
   0x7   :  { %50 = vperm.xlu0 %540, %v40_v7   ;;  %60 = vperm.xlu1 %541, %v42_v8  }
   0x8   :  { %472 = vmatmul.mubr.msk.bf16.vlgmr.msra.gmra.mrb[0].mxu0 %vm113_vm1, %v544_v4 }
   0x9   :  { %475 = vmatprep.mubr.msk.bf16.mxu0 %vm113_vm1, %v545_v5 }
   0xa   :  { %14 = vsyncpa [#allocation4], 0  ;;  %v546_v11 = vld [vmem:[%s706_s1 + $0x18] sm:$0xff]   ;;  %v44_v12 = vld [vmem:[%s707_s2 + $0x20] sm:$0xff]  ;;  %vm231_vm2 = vcmask 523264   ;;  %v572_v61 = vmov 0.0|0.0  }
   0xb   :  { %55 = vperm.xlu0 %540, %v41_v9   ;;  %65 = vperm.xlu1 %541, %v43_v10   ;;  %v45_v13 = vld [vmem:[%s707_s2 + $0x28] sm:$0xff]  ;;  %v46_v14 = vld [vmem:[%s707_s2 + $0x30] sm:$0xff]  ;;  %v47_v15 = vld [vmem:[%s707_s2 + $0x38] sm:$0xff]  ;;  %vm573_vm3 = vmmov 0   ;;  %v574_v62 = vmov 0.0   ;;  %vm344_vm4 = vcmask 261120  }
   0xc   :  { %v207_v16 = vld [vmem:[%s709_s4] sm:$0xff]  ;;  %v208_v17 = vld [vmem:[%s709_s4 + $0x8] sm:$0xff]  ;;  %v209_v18 = vld [vmem:[%s709_s4 + $0x10] sm:$0xff]  ;;  %528 = vmatprep.subr.bf16.mxu0 %v572_v61  ;;  %s575_s16 = smov [#allocation3]  }
   0xd   :  { %v210_v19 = vld [vmem:[%s709_s4 + $0x18] sm:$0xff]  ;;  %v334_v20 = vld [vmem:[#allocation2] sm:$0x1]  ;;  %v204_v58 = vld [vmem:[%s708_s3 + $0x8] sm:$0xff]  ;;  %s425_s17 = sshll.u32 %s575_s16, 4  ;;  %s426_s17 = int_to_ptr.vmem [resolvable:$true] %s425_s17 }
   0xe   :  { %v203_v21 = vld [vmem:[%s708_s3] sm:$0xff]  ;;  %v205_v59 = vld [vmem:[%s708_s3 + $0x10] sm:$0xff]  ;;  %v206_v60 = vld [vmem:[%s708_s3 + $0x18] sm:$0xff]  ;;  %s547_s18 = scalar_lea.vmem %s426_s17, 16  ;;  %s551_s19 = scalar_lea.vmem %s426_s17, 32 }
   0xf   :  { %70 = vperm.xlu0 %540, %v44_v12   ;;  %75 = vperm.xlu1 %541, %v45_v13   ;;  %p548_p0 = scmp.ne.s32.totalorder %s426_s17, %s547_s18  ;;  %p552_p1 = scmp.lt.s32.totalorder %s426_s17, %s426_s17 }
  0x10   :  { %476 = vmatmul.mubr.msk.bf16.gmra.mrb[4].mxu0 %vm113_vm1, %v546_v11  ;;  %495 = vmatprep.mubr.msk.f32.mxu1 %vm231_vm2, %v203_v21  ;;  %p553_p2 = scmp.lt.s32.totalorder %s551_s19, %s547_s18 }
  0x11   :  { %509 = vmatprep.mubr.msk.f32.mxu0 %vm573_vm3, %v574_v62 }
  0x12   :  { %p554_p3 = por %p553_p2, %p552_p1 }
  0x13   :  { %80 = vperm.xlu0 %540, %v46_v14   ;;  %85 = vperm.xlu1 %541, %v47_v15  }
  0x14   :  { %p555_p4 = pnand %p554_p3, %p548_p0 }
  0x17   :  { %213 = vperm.xlu0 %540, %v207_v16   ;;  %218 = vperm.xlu1 %541, %v208_v17   ;;  %v333_v17 = vld [vmem:[%s710_s5] sm:$0x1] }
  0x1b   :  { %223 = vperm.xlu0 %540, %v209_v18   ;;  %228 = vperm.xlu1 %541, %v210_v19   ;;  %v340_v18 = vlaneseq }
  0x1d   :  { %v341_v19 = vshrl.u32 %v340_v18, 7 }
  0x1f   :  { %337 = vperm.xlu0 %540, %v334_v20   ;;  %v342_v20 = vsub.s32 0, %v341_v19 }
  0x86   :  { %v51_v22 = vpop.permute.xlu0 %50  ;;  %v61_v23 = vpop.permute.xlu1 %60 }
  0x8a   :  { %v56_v24 = vpop.permute.xlu0 %55  ;;  %v66_v25 = vpop.permute.xlu1 %65 }
  0x8e   :  { %v71_v29 = vpop.permute.xlu0 %70  ;;  %v76_v34 = vpop.permute.xlu1 %75 }
  0x92   :  { %v81_v41 = vpop.permute.xlu0 %80  ;;  %v86_v46 = vpop.permute.xlu1 %85 }
  0x96   :  { %v219_v63 = vpop.permute.xlu1 %218  ;;  %v214_v0 = vpop.permute.xlu0 %213 }
  0x9a   :  { %v229_v6 = vpop.permute.xlu1 %228  ;;  %v224_v9 = vpop.permute.xlu0 %223 }
  0x9e   :  { %v338_v21 = vpop.permute.xlu0 %337 }
  0xdb   :  { %v473_v26 = vpop.f32.mrb[0].mxu0 }
  0xdc   :  { %v173_v27 = vadd.f32 %v473_v26, %v61_v23  ;;  %v164_v28 = vpop.f32.mrb[1].mxu0 }
  0xdd   :  { %v165_v30 = vadd.f32 %v164_v28, %v51_v22  ;;  %v474_v31 = vpop.f32.mrb[2].mxu0  ;;  %v343_v22 = vrot.slane %v338_v21, %v342_v20 }
  0xde   :  { %v176_v32 = vadd.f32 %v474_v31, %v66_v25  ;;  %v167_v33 = vpop.f32.mrb[3].mxu0  ;;  %v197_v36 = vmax.f32 %v173_v27, 0.0 }
  0xdf   :  { %v168_v35 = vadd.f32 %v167_v33, %v56_v24  ;;  %v195_v38 = vmax.f32 %v165_v30, 0.0 }
  0xe0   :  { %v198_v37 = vmax.f32 %v176_v32, 0.0 }
  0xe1   :  { %v196_v39 = vmax.f32 %v168_v35, 0.0 }
  0xe2   :  { %v516_v40 = vpack.c.bf16 %v198_v37, %v197_v36 }
  0xe3   :  { %v477_v42 = vpop.f32.mrb[4].mxu0  ;;  %v512_v43 = vpack.c.bf16 %v196_v39, %v195_v38 }
  0xe4   :  { %v189_v44 = vadd.f32 %v477_v42, %v81_v41  ;;  %v180_v45 = vpop.f32.mrb[5].mxu0 }
  0xe5   :  { %v181_v47 = vadd.f32 %v180_v45, %v71_v29  ;;  %v478_v48 = vpop.f32.mrb[6].mxu0  ;;  %513 = vmatprep.subr.bf16.mxu1 %v512_v43 }
  0xe6   :  { %v192_v49 = vadd.f32 %v478_v48, %v86_v46  ;;  %v183_v50 = vpop.f32.mrb[7].mxu0  ;;  %515 = vmatpush3.bf16.msra.mxu1 %v512_v43  ;;  %v201_v52 = vmax.f32 %v189_v44, 0.0 }
  0xe7   :  { %v184_v51 = vadd.f32 %v183_v50, %v76_v34  ;;  %517 = vmatprep.subr.bf16.mxu1 %v516_v40  ;;  %v199_v54 = vmax.f32 %v181_v47, 0.0 }
  0xe8   :  { %v202_v53 = vmax.f32 %v192_v49, 0.0 }
  0xe9   :  { %v200_v55 = vmax.f32 %v184_v51, 0.0 }
  0xea   :  { %v524_v56 = vpack.c.bf16 %v202_v53, %v201_v52  ;;  %519 = vmatpush3.bf16.msra.mxu1 %v516_v40 }
  0xeb   :  { %v520_v57 = vpack.c.bf16 %v200_v55, %v199_v54 }
  0xed   :  { %521 = vmatprep.subr.bf16.mxu1 %v520_v57 }
  0xee   :  { %523 = vmatpush3.bf16.msra.mxu1 %v520_v57 }
  0xef   :  { %525 = vmatprep.subr.bf16.mxu1 %v524_v56 }
  0xf2   :  { %527 = vmatpush3.bf16.msra.mxu1 %v524_v56 }
  0xf5   :  { %496 = vmatmul.mubr.msk.f32.vlgmr.msra.gmra.mrb[0].mxu1 %vm231_vm2, %v204_v58 }
  0xf6   :  { %498 = vmatprep.mubr.msk.f32.mxu1 %vm231_vm2, %v205_v59 }
  0xf9   :  { %499 = vmatmul.mubr.msk.f32.gmra.mrb[2].mxu1 %vm231_vm2, %v206_v60 }
 0x1c8   :  { %v497_v1 = vpop.f32.mrb[0].mxu1 }
 0x1c9   :  { %v316_v2 = vadd.f32 %v497_v1, %v219_v63  ;;  %v310_v3 = vpop.f32.mrb[1].mxu1 }
 0x1ca   :  { %v311_v4 = vadd.f32 %v310_v3, %v214_v0 }
 0x1cb   :  { %v330_v5 = vmax.f32 %v316_v2, 0.0 }
 0x1cc   :  { %v329_v7 = vmax.f32 %v311_v4, 0.0  ;;  %v500_v8 = vpop.f32.mrb[2].mxu1 }
 0x1cd   :  { %v326_v10 = vadd.f32 %v500_v8, %v229_v6  ;;  %v320_v11 = vpop.f32.mrb[3].mxu1 }
 0x1ce   :  { %v529_v12 = vpack.c.bf16 %v330_v5, %v329_v7  ;;  %v321_v13 = vadd.f32 %v320_v11, %v224_v9 }
 0x1cf   :  { %v332_v14 = vmax.f32 %v326_v10, 0.0 }
 0x1d0   :  { %v331_v15 = vmax.f32 %v321_v13, 0.0  ;;  %530 = vmatpush3.bf16.msra.mxu0 %v529_v12 }
 0x1d1   :  { %531 = vmatprep.subr.bf16.mxu0 %v572_v61 }
 0x1d2   :  { %v532_v16 = vpack.c.bf16 %v332_v14, %v331_v15 }
 0x1d4   :  { %533 = vmatpush3.bf16.msra.mxu0 %v532_v16 }
 0x1d7   :  { %510 = vmatmul.mubr.msk.f32.vlgmr.msra.gmra.mrb[8].mxu0 %vm344_vm4, %v333_v17 }
 0x2aa   :  { %v414_v23 = vpop.f32.mrb[8].mxu0 }
 0x2ab   :  { %v415_v24 = vadd.f32 %v414_v23, %v343_v22  ;;  %v511_v25 = vpop.f32.mrb[9].mxu0 }
 0x2ad   :  { %418 = vst [vmem:[#allocation3] sm:$0x1] %v415_v24 }
 0x2ae   :  { %558 = shalt.err (!%p555_p4)
}
 0x2af   :  { %s559_s21 = scalar_lea.hbm %s712_s7, 16 }
 0x2b0   :  { %p560_p5 = scmp.ne.s32.totalorder %s712_s7, %s559_s21  ;;  %p563_p6 = scmp.lt.u32.totalorder %s559_s21, %s712_s7 }
 0x2b2   :  { %p565_p7 = pnand %p563_p6, %p560_p5 }
 0x2b4   :  { %568 = shalt.err (!%p565_p7)
}
 0x2b5   :  { %428 = dma.vmem_to_hbm [thread:$0]  %s426_s17, 16, %s712_s7, [#allocation4]  }
 0x2b6   :  { %569 = dma.done.wait [#allocation4], 16  }
 0x2b7   :  { %570 = vsyncadd [#allocation4], 4294967280 }
 0x2b8   :  { %432 = vsyncpa [#allocation4], 1 }

</bundles_post_ra>
